<compile_context>
chip_gen: v7x
topology: tpu7x:2x2x1
jax: 0.10.0
libtpu: 0.0.40
codegen_flags: <defaults>
</compile_context>

<pallas_src>
import jax
import jax.numpy as jnp
from jax import lax
from jax.experimental import pallas as pl
from jax.experimental.pallas import tpu as pltpu


def _round_up(v, m):
    return (v + m - 1) // m * m


def _pad2(a, shape):
    """Zero-pad a 2D array up to `shape`, skipping the copy if already aligned."""
    if a.shape == tuple(shape):
        return a
    return jnp.zeros(shape, a.dtype).at[:a.shape[0], :a.shape[1]].set(a)


def _vmem_budget_bytes():
    # ~0.7 * per-core VMEM: ~90 MiB on v5e/v6e (128 MiB), ~45 MiB on v7x (64 MiB).
    try:
        cap = int(pltpu.get_tpu_info().vmem_capacity_bytes)
    except Exception:
        cap = 64 * 1024 * 1024          # conservative (v7x per-core VMEM)
    return int(max(32 * 1024 * 1024, min(cap * 0.7, 100 * 1024 * 1024)))


def _workset_bytes(tm, tn, tk, rp, out_itemsize):
    """Rough double-buffered working-set estimate for one grid step."""
    lane_r = max(rp, 128)               # small last dims pad to 128 lanes in VMEM
    return (2 * tm * tk * 2             # x tiles (bf16, double buffered)
            + 2 * tn * tk * 2           # W tiles (bf16)
            + 2 * tm * lane_r * 4       # z tiles (f32)
            + 2 * rp * tn * 4           # scaled lora_B tiles (f32)
            + 2 * 8 * tn * 4            # bias tiles (f32)
            + 2 * tm * tn * out_itemsize
            + tm * tn * 4)              # f32 accumulator scratch


# ----------------------------- Pallas kernel ------------------------------- #

def _fused_lora_linear_kernel(x_ref, w_ref, z_ref, bz_ref, bias_ref, o_ref,
                              acc_ref):
    """out = x @ W.T + z @ Bz + bias, K-tiled over Din with an f32 accumulator.

    x_ref   : (tm, tk) bf16   activation tile
    w_ref   : (tn, tk) bf16   base-weight tile in its native (Dout, Din) layout
    z_ref   : (tm, Rp) f32    low-rank activations (already x @ A.T, task-routed)
    bz_ref  : (Rp, tn) f32    scaling * lora_B.T tile
    bias_ref: (1, tn)  f32
    o_ref   : (tm, tn) output dtype
    acc_ref : (tm, tn) f32 VMEM scratch
    """
    k = pl.program_id(2)

    @pl.when(k == 0)
    def _init():
        # Bias + (pre-scaled) low-rank update folded into the accumulator once
        # per output tile; the rank matmul is a single cheap MXU pass.
        acc_ref[...] = bias_ref[...] + jnp.dot(
            z_ref[...], bz_ref[...], preferred_element_type=jnp.float32)

    # Base matmul against W in its native (Dout, Din) layout (NT contraction),
    # so no transposed / LoRA-folded copy of W is ever written to HBM.
    acc_ref[...] += lax.dot_general(
        x_ref[...], w_ref[...],
        dimension_numbers=(((1,), (1,)), ((), ())),
        preferred_element_type=jnp.float32)

    @pl.when(k == pl.num_programs(2) - 1)
    def _finish():
        o_ref[...] = acc_ref[...].astype(o_ref.dtype)


def _fused_lora_linear(x2d, W, bias, z, bzT, *, out_dtype,
                       tm=512, tn=512, tk=1024):
    """Launch: out[M, Dout] = x2d @ W.T + z @ bzT + bias  (bf16 MXU, f32 acc)."""
    M, Din = x2d.shape
    Dout = W.shape[0]
    R = z.shape[1]
    Rp = _round_up(R, 8)

    # Tiles adapted to (possibly small) problem; lane dims multiples of 128.
    tm = max(16, min(tm, _round_up(M, 16)))
    tk = min(tk, _round_up(Din, 128))
    tn = min(tn, _round_up(Dout, 128))

    budget = _vmem_budget_bytes()
    out_itemsize = jnp.dtype(out_dtype).itemsize
    while _workset_bytes(tm, tn, tk, Rp, out_itemsize) > budget:
        if tk > 512:
            tk //= 2
        elif tm > 128:
            tm //= 2
        elif tn > 128:
            tn //= 2
        elif tk > 128:
            tk //= 2
        else:
            break

    Mp = _round_up(M, tm)
    Dinp = _round_up(Din, tk)
    Doutp = _round_up(Dout, tn)

    # bf16 datapath for the heavy matmul; tiny rank-R operands stay f32.
    # Pads are only materialized when shapes are not already tile-aligned.
    xb = _pad2(x2d.astype(jnp.bfloat16), (Mp, Dinp))
    wb = _pad2(W.astype(jnp.bfloat16), (Doutp, Dinp))
    zb = _pad2(z.astype(jnp.float32), (Mp, Rp))
    bzb = _pad2(bzT.astype(jnp.float32), (Rp, Doutp))
    bb = _pad2(bias.astype(jnp.float32).reshape(1, Dout), (1, Doutp))

    out = pl.pallas_call(
        _fused_lora_linear_kernel,
        out_shape=jax.ShapeDtypeStruct((Mp, Doutp), out_dtype),
        grid_spec=pltpu.PrefetchScalarGridSpec(
            num_scalar_prefetch=0,
            grid=(Mp // tm, Doutp // tn, Dinp // tk),
            in_specs=[
                pl.BlockSpec((tm, tk), lambda i, j, k: (i, k)),   # x
                pl.BlockSpec((tn, tk), lambda i, j, k: (j, k)),   # W (native)
                pl.BlockSpec((tm, Rp), lambda i, j, k: (i, 0)),   # z
                pl.BlockSpec((Rp, tn), lambda i, j, k: (0, j)),   # scaled B.T
                pl.BlockSpec((1, tn), lambda i, j, k: (0, j)),    # bias
            ],
            out_specs=pl.BlockSpec((tm, tn), lambda i, j, k: (i, j)),
            scratch_shapes=[pltpu.VMEM((tm, tn), jnp.float32)],
        ),
        compiler_params=pltpu.CompilerParams(
            dimension_semantics=("parallel", "parallel", "arbitrary"),
            vmem_limit_bytes=budget,
        ),
    )(xb, wb, zb, bzb, bb)
    return out[:M, :Dout]


# ------------------------------- wrappers ---------------------------------- #

def lora_forward_task(x, W, bias, lora_A, lora_B, scaling, task_id, *,
                      tm=512, tn=512, tk=1024):
    """forward(x, task_id=...): single shared adapter (eval-mode dropout)."""
    B, S, Din = x.shape
    Dout = W.shape[0]
    x2d = x.reshape(B * S, Din)

    # Tiny rank-r pre-pass kept in f32:  z = x @ A_t.T,  Bz = scaling * B_t.T.
    a_t = lora_A[task_id].astype(jnp.float32)                     # (r, Din)
    z = x2d.astype(jnp.float32) @ a_t.T                           # (M, r)
    bzT = scaling * lora_B[task_id].astype(jnp.float32).T         # (r, Dout)

    out = _fused_lora_linear(x2d, W, bias, z, bzT, out_dtype=x.dtype,
                             tm=tm, tn=tn, tk=tk)
    return out.reshape(B, S, Dout)


def lora_forward_inference(x, W, bias, lora_A, lora_B, task_keys, scaling, *,
                           tm=512, tn=512, tk=1024):
    """forward(x, inference_mode=True): per-batch task routing.

    Routing + the rank-r projection are cheap plain-JAX glue; the routed task
    choice is encoded as a block-one-hot (num_tasks*r)-wide rank activation so
    the heavy Pallas matmul is batch-agnostic (large shared row tiles, W read
    once per row tile, no per-Dout-tile recompute of the A-projection).
    """
    B, S, Din = x.shape
    Dout = W.shape[0]
    T, r, _ = lora_A.shape

    # --- routing (get_task_similarity + argmax) ---
    x_mean = x.mean(axis=1)                                           # (B, Din)
    x_norm = x_mean / jnp.maximum(
        jnp.linalg.norm(x_mean, axis=-1, keepdims=True), 1e-12)
    keys_norm = task_keys / jnp.maximum(
        jnp.linalg.norm(task_keys, axis=-1, keepdims=True), 1e-12)
    tid = jnp.argmax(x_norm @ keys_norm.T, axis=1)                    # (B,)

    # --- rank-r pre-pass (f32), expanded to a block-one-hot (T*r) layout ---
    a_sel = lora_A[tid].astype(jnp.float32)                           # (B, r, Din)
    xa = jnp.einsum('bsd,brd->bsr', x.astype(jnp.float32), a_sel)     # (B, S, r)
    onehot = jax.nn.one_hot(tid, T, dtype=jnp.float32)                # (B, T)
    z = jnp.einsum('bsr,bt->bstr', xa, onehot).reshape(B * S, T * r)
    bzT = (scaling * jnp.transpose(lora_B, (0, 2, 1)).astype(jnp.float32)
           ).reshape(T * r, Dout)

    out = _fused_lora_linear(x.reshape(B * S, Din), W, bias, z, bzT,
                             out_dtype=x.dtype, tm=tm, tn=tn, tk=tk)
    return out.reshape(B, S, Dout)


# ---------------------------- pure-JAX reference ---------------------------- #

def reference_forward(x, W, bias, lora_A, lora_B, task_keys, scaling,
                      task_id=None, inference_mode=False):
    base = jnp.einsum("bsd,od->bso", x, W) + bias
    if inference_mode and task_id is None:
        x_mean = x.mean(axis=1)
        x_norm = x_mean / jnp.maximum(
            jnp.linalg.norm(x_mean, axis=-1, keepdims=True), 1e-12)
        keys_norm = task_keys / jnp.maximum(
            jnp.linalg.norm(task_keys, axis=-1, keepdims=True), 1e-12)
        tid = jnp.argmax(x_norm @ keys_norm.T, axis=1)
        A_sel = lora_A[tid]                                          # (B, r, Din)
        B_sel = lora_B[tid]                                          # (B, Dout, r)
        lr = jnp.einsum("bsd,brd->bsr", x, A_sel)
        lora = jnp.einsum("bsr,bor->bso", lr, B_sel) * scaling
    else:
        tid = 0 if task_id is None else task_id
        lora = (x @ lora_A[tid].T) @ lora_B[tid].T * scaling
    return base + lora


# ----------------------------------- main ----------------------------------- #

if __name__ == "__main__":
    B, S = 2, 8
    Din, Dout = 32, 32
    num_tasks, rank, alpha = 10, 4, 1
    scaling = alpha / rank

    key = jax.random.PRNGKey(0)
    kx, kw, kb, ka, kbm, kk = jax.random.split(key, 6)

    x = jax.random.normal(kx, (B, S, Din), dtype=jnp.float32)
    # base_linear: nn.Linear(Din, Dout) -> weight (Dout, Din), bias (Dout,)
    W = jax.random.normal(kw, (Dout, Din), dtype=jnp.float32) * 0.1
    bias = jax.random.normal(kb, (Dout,), dtype=jnp.float32) * 0.1
    # Per-task LoRA params: lora_A (T, r, Din), lora_B (T, Dout, r).
    # (PyTorch init would zero lora_B; use nonzero values so the kernel path
    #  is actually exercised.)
    lora_A = jax.random.normal(ka, (num_tasks, rank, Din), dtype=jnp.float32) * 0.1
    lora_B = jax.random.normal(kbm, (num_tasks, Dout, rank), dtype=jnp.float32) * 0.1
    task_keys = jax.random.normal(kk, (num_tasks, Din), dtype=jnp.float32) * 0.02

    # --- default branch (explicit / current task id) ---
    task_id = 3
    out_task = jax.block_until_ready(
        lora_forward_task(x, W, bias, lora_A, lora_B, scaling, task_id))
    ref_task = reference_forward(x, W, bias, lora_A, lora_B, task_keys, scaling,
                                 task_id=task_id)
    assert out_task.shape == (B, S, Dout)
    assert jnp.allclose(out_task, ref_task, rtol=2e-2, atol=2e-2), (
        "task branch max err", float(jnp.max(jnp.abs(out_task - ref_task))))

    # --- inference_mode branch (per-batch task routing) ---
    out_inf = jax.block_until_ready(
        lora_forward_inference(x, W, bias, lora_A, lora_B, task_keys, scaling))
    ref_inf = reference_forward(x, W, bias, lora_A, lora_B, task_keys, scaling,
                                inference_mode=True)
    assert out_inf.shape == (B, S, Dout)
    assert jnp.allclose(out_inf, ref_inf, rtol=2e-2, atol=2e-2), (
        "inference branch max err", float(jnp.max(jnp.abs(out_inf - ref_inf))))

    print("KERNEL_OK")
</pallas_src>

<mosaic_0001>
module attributes {stable_mosaic.version = 11 : i64} {
  func.func @_fused_lora_linear_kernel(%arg0: i32, %arg1: i32, %arg2: i32, %arg3: memref<16x128xbf16, #tpu.memory_space<vmem>>, %arg4: memref<128x128xbf16, #tpu.memory_space<vmem>>, %arg5: memref<16x8xf32, #tpu.memory_space<vmem>>, %arg6: memref<8x128xf32, #tpu.memory_space<vmem>>, %arg7: memref<1x128xf32, #tpu.memory_space<vmem>>, %arg8: memref<16x128xf32, #tpu.memory_space<vmem>>, %arg9: memref<16x128xf32, #tpu.memory_space<vmem>>) attributes {dimension_semantics = [#tpu.dimension_semantics<parallel>, #tpu.dimension_semantics<parallel>, #tpu.dimension_semantics<arbitrary>], iteration_bounds = array<i64: 1, 1, 1>, scalar_prefetch = 0 : i64, scratch_operands = 1 : i64, tpu.core_type = #tpu.core_type<tc>, window_params = [{transform_indices = @transform_0, window_bounds = array<i64: 16, 128>}, {transform_indices = @transform_1, window_bounds = array<i64: 128, 128>}, {transform_indices = @transform_2, window_bounds = array<i64: 16, 8>}, {transform_indices = @transform_3, window_bounds = array<i64: 8, 128>}, {transform_indices = @transform_4, window_bounds = array<i64: 1, 128>}, {transform_indices = @transform_5, window_bounds = array<i64: 16, 128>}]} {
    %c0_i32 = arith.constant 0 : i32
    %0 = arith.cmpi eq, %arg2, %c0_i32 : i32
    %1 = arith.extui %0 : i1 to i32
    %c0_i32_0 = arith.constant 0 : i32
    %2 = arith.cmpi ne, %1, %c0_i32_0 : i32
    scf.if %2 {
      %c0_10 = arith.constant 0 : index
      %c0_11 = arith.constant 0 : index
      %12 = vector.load %arg7[%c0_10, %c0_11] : memref<1x128xf32, #tpu.memory_space<vmem>>, vector<1x128xf32>
      %c0_12 = arith.constant 0 : index
      %c0_13 = arith.constant 0 : index
      %13 = vector.load %arg5[%c0_12, %c0_13] : memref<16x8xf32, #tpu.memory_space<vmem>>, vector<16x8xf32>
      %c0_14 = arith.constant 0 : index
      %c0_15 = arith.constant 0 : index
      %14 = vector.load %arg6[%c0_14, %c0_15] : memref<8x128xf32, #tpu.memory_space<vmem>>, vector<8x128xf32>
      %cst_16 = arith.constant dense<0.000000e+00> : vector<16x128xf32>
      %15 = tpu.matmul %13, %14, %cst_16 {dimension_numbers = #tpu.dot_dimension_numbers<[1], [0], [0], [1], [0, 0, 1, 1], [], []>} : vector<16x8xf32>, vector<8x128xf32>, vector<16x128xf32> -> vector<16x128xf32>
      %16 = vector.broadcast %12 : vector<1x128xf32> to vector<16x128xf32>
      %17 = arith.addf %16, %15 : vector<16x128xf32>
      %c0_17 = arith.constant 0 : index
      %c0_18 = arith.constant 0 : index
      %18 = vector.load %arg9[%c0_17, %c0_18] : memref<16x128xf32, #tpu.memory_space<vmem>>, vector<16x128xf32>
      tpu.vector_store %arg9[%c0_17, %c0_18], %17 {strides = array<i32>} : memref<16x128xf32, #tpu.memory_space<vmem>>, vector<16x128xf32>,
    } else {
    }
    %c0 = arith.constant 0 : index
    %c0_1 = arith.constant 0 : index
    %3 = vector.load %arg9[%c0, %c0_1] : memref<16x128xf32, #tpu.memory_space<vmem>>, vector<16x128xf32>
    %c0_2 = arith.constant 0 : index
    %c0_3 = arith.constant 0 : index
    %4 = vector.load %arg3[%c0_2, %c0_3] : memref<16x128xbf16, #tpu.memory_space<vmem>>, vector<16x128xbf16>
    %c0_4 = arith.constant 0 : index
    %c0_5 = arith.constant 0 : index
    %5 = vector.load %arg4[%c0_4, %c0_5] : memref<128x128xbf16, #tpu.memory_space<vmem>>, vector<128x128xbf16>
    %cst = arith.constant dense<0.000000e+00> : vector<16x128xf32>
    %6 = tpu.matmul %4, %5, %cst {dimension_numbers = #tpu.dot_dimension_numbers<[1], [1], [0], [0], [0, 0, 1, 0], [], []>} : vector<16x128xbf16>, vector<128x128xbf16>, vector<16x128xf32> -> vector<16x128xf32>
    %7 = arith.addf %3, %6 : vector<16x128xf32>
    %c0_6 = arith.constant 0 : index
    %c0_7 = arith.constant 0 : index
    %8 = vector.load %arg9[%c0_6, %c0_7] : memref<16x128xf32, #tpu.memory_space<vmem>>, vector<16x128xf32>
    tpu.vector_store %arg9[%c0_6, %c0_7], %7 {strides = array<i32>} : memref<16x128xf32, #tpu.memory_space<vmem>>, vector<16x128xf32>,
    %c0_i32_8 = arith.constant 0 : i32
    %9 = arith.cmpi eq, %arg2, %c0_i32_8 : i32
    %10 = arith.extui %9 : i1 to i32
    %c0_i32_9 = arith.constant 0 : i32
    %11 = arith.cmpi ne, %10, %c0_i32_9 : i32
    scf.if %11 {
      %c0_10 = arith.constant 0 : index
      %c0_11 = arith.constant 0 : index
      %12 = vector.load %arg9[%c0_10, %c0_11] : memref<16x128xf32, #tpu.memory_space<vmem>>, vector<16x128xf32>
      %c0_12 = arith.constant 0 : index
      %c0_13 = arith.constant 0 : index
      %13 = vector.load %arg8[%c0_12, %c0_13] : memref<16x128xf32, #tpu.memory_space<vmem>>, vector<16x128xf32>
      tpu.vector_store %arg8[%c0_12, %c0_13], %12 {strides = array<i32>} : memref<16x128xf32, #tpu.memory_space<vmem>>, vector<16x128xf32>,
    } else {
    }
    return
  }
  func.func @transform_0(%arg0: i32, %arg1: i32, %arg2: i32) -> (i32, i32) {
    %c0_i32 = arith.constant 0 : i32
    return %arg0, %arg2 : i32, i32
  }
  func.func @transform_1(%arg0: i32, %arg1: i32, %arg2: i32) -> (i32, i32) {
    %c0_i32 = arith.constant 0 : i32
    return %arg1, %arg2 : i32, i32
  }
  func.func @transform_2(%arg0: i32, %arg1: i32, %arg2: i32) -> (i32, i32) {
    %c0_i32 = arith.constant 0 : i32
    %c0_i32_0 = arith.constant 0 : i32
    return %arg0, %c0_i32 : i32, i32
  }
  func.func @transform_3(%arg0: i32, %arg1: i32, %arg2: i32) -> (i32, i32) {
    %c0_i32 = arith.constant 0 : i32
    %c0_i32_0 = arith.constant 0 : i32
    return %c0_i32, %arg1 : i32, i32
  }
  func.func @transform_4(%arg0: i32, %arg1: i32, %arg2: i32) -> (i32, i32) {
    %c0_i32 = arith.constant 0 : i32
    %c0_i32_0 = arith.constant 0 : i32
    return %c0_i32, %arg1 : i32, i32
  }
  func.func @transform_5(%arg0: i32, %arg1: i32, %arg2: i32) -> (i32, i32) {
    %c0_i32 = arith.constant 0 : i32
    return %arg0, %arg1 : i32, i32
  }
}

</mosaic_0001>

<bundles_post_ra>
// kernel: tpu_custom_call.1
= control target key start
LH: loop header
LB: loop body
LE: loop exit
PB: predicated region body
PF: predicated region fallthrough
CT: control target
= control target key end

     0   :  { %10 = vsyncpa [#allocation4], 0  ;;  %s470_s0 = inlined_call_operand.vmem [shape: bf16[16,128], index: 0, kind: input, shape index: {}]   ;;  %s471_s1 = inlined_call_operand.hbm [shape: bf16[128,128], index: 1, kind: input, shape index: {}]   ;;  %s472_s2 = inlined_call_operand.vmem [shape: f32[16,8], index: 2, kind: input, shape index: {}]   ;;  %s473_s3 = inlined_call_operand.vmem [shape: f32[8,128], index: 3, kind: input, shape index: {}]   ;;  %s474_s4 = inlined_call_operand.vmem [shape: f32[1,128], index: 4, kind: input, shape index: {}]   ;;  %s475_s5 = inlined_call_operand.hbm [shape: f32[16,128], index: 5, kind: output, shape index: {}]  }
   0x1   :  { %11 = vsyncpa [#allocation5], 0  ;;  %s393_s18 = smov [#allocation3]   ;;  %s345_s22 = scalar_lea.hbm %s471_s1, 1024 }
   0x2   :  { %s19_s19 = sshll.u32 %s393_s18, 4  ;;  %p346_p0 = scmp.ne.s32.totalorder %s471_s1, %s345_s22  ;;  %s20_s19 = int_to_ptr.vmem [resolvable:$true] %s19_s19 }
   0x3   :  { %p349_p1 = scmp.lt.u32.totalorder %s345_s22, %s471_s1 }
   0x5   :  { %p351_p2 = pnand %p349_p1, %p346_p0 }
   0x7   :  { %354 = shalt.err (!%p351_p2)
}
   0x8   :  { %s355_s27 = scalar_lea.vmem %s20_s19, 1024  ;;  %p360_p4 = scmp.lt.s32.totalorder %s20_s19, %s20_s19 }
   0x9   :  { %p356_p3 = scmp.ne.s32.totalorder %s20_s19, %s355_s27  ;;  %p361_p5 = scmp.lt.s32.totalorder %s355_s27, %s355_s27 }
   0xb   :  { %p362_p6 = por %p361_p5, %p360_p4 }
   0xd   :  { %p363_p7 = pnand %p362_p6, %p356_p3 }
   0xf   :  { %366 = shalt.err (!%p363_p7)
}
  0x10   :  { %s394_s28 = smov 64   ;;  %s395_s29 = smov 4  }
  0x11   :  { %25 = dma.hbm_to_vmem [thread:$0]  %s471_s1, 1024, %s20_s19, [#allocation4], %s394_s28, %s394_s28, %s395_s29  }
  0x12   :  { %389 = dma.done.wait [#allocation4], 1024  }
  0x13   :  { %390 = vsyncadd [#allocation4], 4294966272  ;;  %v396_v0 = vmov 0.0   ;;  %vm397_vm0 = vmmov 0   ;;  %v336_v1 = vld [vmem:[#allocation3] sm:$0xff]   ;;  %v337_v2 = vld [vmem:[#allocation3 + $0x8] sm:$0xff]  }
  0x14   :  { %308 = vmatprep.subr.bf16.mxu1 %v396_v0  ;;  %324 = vmatprep.mubr.msk.bf16.mxu1 %vm397_vm0, %v396_v0  ;;  %vm44_vm1 = vcmask 64512   ;;  %v43_v3 = vld [vmem:[%s473_s3] sm:$0xff]  ;;  %v42_v5 = vld [vmem:[%s472_s2 + $0x8] sm:$0xff]  ;;  %v338_v6 = vld [vmem:[#allocation3 + $0x10] sm:$0xff]   ;;  %s398_s14 = smov [#allocation6]  }
  0x15   :  { %309 = vmatpush3.bf16.xpose.msra.mxu1 %v336_v1  ;;  %v41_v4 = vld [vmem:[%s472_s2] sm:$0xff]  ;;  %303 = vmatprep.subr.mxu0 %v43_v3  ;;  %v339_v7 = vld [vmem:[#allocation3 + $0x18] sm:$0xff]   ;;  %v341_v9 = vld [vmem:[#allocation3 + $0x28] sm:$0xff]   ;;  %s267_s15 = sshll.u32 %s398_s14, 4  ;;  %s268_s15 = int_to_ptr.vmem [resolvable:$true] %s267_s15 }
  0x16   :  { %310 = vmatprep.subr.bf16.mxu1 %v396_v0  ;;  %305 = vmatprep.mubr.msk.f32.mxu0 %vm44_vm1, %v41_v4  ;;  %v340_v8 = vld [vmem:[#allocation3 + $0x20] sm:$0xff]   ;;  %v342_v10 = vld [vmem:[#allocation3 + $0x30] sm:$0xff]   ;;  %v343_v11 = vld [vmem:[#allocation3 + $0x38] sm:$0xff]   ;;  %p372_p9 = scmp.lt.s32.totalorder %s268_s15, %s268_s15 }
  0x17   :  { %304 = vmatpush3.msra.mxu0 %v43_v3  ;;  %v344_v12 = vld [vmem:[%s470_s0] sm:$0xff]   ;;  %s367_s0 = scalar_lea.vmem %s268_s15, 256 }
  0x18   :  { %306 = vmatmul.mubr.msk.f32.vlgmr.msra.gmra.mrb[0].mxu0 %vm44_vm1, %v42_v5  ;;  %v281_v15 = vld [vmem:[%s474_s4] ss:$0 sm:$0xff]  ;;  %p368_p8 = scmp.ne.s32.totalorder %s268_s15, %s367_s0  ;;  %p373_p10 = scmp.lt.s32.totalorder %s367_s0, %s367_s0 }
  0x1a   :  { %p374_p11 = por %p373_p10, %p372_p9 }
  0x1c   :  { %p375_p12 = pnand %p374_p11, %p368_p8 }
  0x1d   :  { %311 = vmatpush3.bf16.xpose.msra.mxu1 %v337_v2 }
  0x1e   :  { %312 = vmatprep.subr.bf16.mxu1 %v396_v0 }
  0x25   :  { %313 = vmatpush3.bf16.xpose.msra.mxu1 %v338_v6 }
  0x26   :  { %314 = vmatprep.subr.bf16.mxu1 %v396_v0 }
  0x2d   :  { %315 = vmatpush3.bf16.xpose.msra.mxu1 %v339_v7 }
  0x2e   :  { %316 = vmatprep.subr.bf16.mxu1 %v396_v0 }
  0x35   :  { %317 = vmatpush3.bf16.xpose.msra.mxu1 %v340_v8 }
  0x36   :  { %318 = vmatprep.subr.bf16.mxu1 %v396_v0 }
  0x3d   :  { %319 = vmatpush3.bf16.xpose.msra.mxu1 %v341_v9 }
  0x3e   :  { %320 = vmatprep.subr.bf16.mxu1 %v396_v0 }
  0x45   :  { %321 = vmatpush3.bf16.xpose.msra.mxu1 %v342_v10 }
  0x46   :  { %322 = vmatprep.subr.bf16.mxu1 %v396_v0 }
  0x4d   :  { %323 = vmatpush3.bf16.xpose.msra.mxu1 %v343_v11 }
  0x54   :  { %325 = vmatmul.mubr.bf16.vlgmr.msra.gmra.mrb[0].mxu1 %v344_v12 }
  0xeb   :  { %v307_v13 = vpop.f32.mrb[0].mxu0 }
  0xec   :  { %v117_v14 = vpop.f32.mrb[1].mxu0  ;;  %v133_v17 = vadd.f32 %v307_v13, %v281_v15 }
  0xed   :  { %v132_v16 = vadd.f32 %v281_v15, %v117_v14 }
 0x127   :  { %v244_v18 = vpop.f32.mrb[0].mxu1 }
 0x128   :  { %v251_v19 = vadd.f32 %v244_v18, %v132_v16  ;;  %v326_v20 = vpop.f32.mrb[1].mxu1 }
 0x129   :  { %v247_v21 = vpop.f32.mrb[2].mxu1 }
 0x12a   :  { %260 = vst [vmem:[#allocation6] sm:$0xff] %v251_v19  ;;  %v252_v22 = vadd.f32 %v247_v21, %v133_v17  ;;  %v327_v23 = vpop.f32.mrb[3].mxu1 }
 0x12c   :  { %261 = vst [vmem:[#allocation6 + $0x8] sm:$0xff] %v252_v22 }
 0x12d   :  { %378 = shalt.err (!%p375_p12)
}
 0x12e   :  { %s379_s17 = scalar_lea.hbm %s475_s5, 256 }
 0x12f   :  { %p380_p13 = scmp.ne.s32.totalorder %s475_s5, %s379_s17  ;;  %p383_p0 = scmp.lt.u32.totalorder %s379_s17, %s475_s5 }
 0x131   :  { %p385_p1 = pnand %p383_p0, %p380_p13 }
 0x133   :  { %388 = shalt.err (!%p385_p1)
}
 0x134   :  { %s399_s22 = smov 128   ;;  %s400_s23 = smov 8  }
 0x135   :  { %273 = dma.vmem_to_hbm [thread:$0]  %s268_s15, 256, %s475_s5, [#allocation5], %s399_s22, %s399_s22, %s400_s23  }
 0x136   :  { %391 = dma.done.wait [#allocation5], 256  }
 0x137   :  { %392 = vsyncadd [#allocation5], 4294967040 }
 0x138   :  { %277 = vsyncpa [#allocation4], 1 }
 0x139   :  { %278 = vsyncpa [#allocation5], 1 }

</bundles_post_ra>
